<compile_context>
chip_gen: v5e
topology: v5e:2x2
jax: 0.10.0
libtpu: 0.0.40
codegen_flags: <defaults>
</compile_context>

<pallas_src>
import jax
import jax.numpy as jnp
from jax.experimental import pallas as pl
from jax.experimental.pallas import tpu as pltpu


def _round_up(n, m):
    return ((n + m - 1) // m) * m


def soft_q_kernel(x_ref, a_ref, w1x_ref, w1a_ref, b1_ref, w2_ref, b2_ref,
                  o_ref):
    # Fused concat: cat([x, a], 1) @ W1 == x @ W1[:Dx] + a @ W1[Dx:].
    h = jnp.dot(x_ref[...], w1x_ref[...], preferred_element_type=jnp.float32)
    h = h + jnp.dot(a_ref[...], w1a_ref[...],
                    preferred_element_type=jnp.float32)
    h = jnp.maximum(h + b1_ref[...], 0.0)                  # f32 epilogue
    q = jnp.dot(h.astype(w2_ref.dtype), w2_ref[...],       # bf16 MXU path
                preferred_element_type=jnp.float32)
    o_ref[...] = (q + b2_ref[...]).astype(o_ref.dtype)


def soft_q_forward(x, a, prepared, *, block_b=512):
    """x: (B, input_shape) f32, a: (B, out_c) f32 -> q: (B, out_d) f32."""
    w1x, w1a, b1, w2p, b2p, out_d = prepared
    B = x.shape[0]
    Dx, H = w1x.shape
    Da = w1a.shape[0]
    Np = w2p.shape[1]                      # lane-padded fc2 width (mult. of 128)

    # Batch tile: multiple of 8 sublanes, capped at block_b.
    TB = block_b if B >= block_b else _round_up(max(B, 1), 8)
    Bp = _round_up(B, TB)

    xb = x.astype(jnp.bfloat16)
    ab = a.astype(jnp.bfloat16)
    if Bp != B:
        xb = jnp.pad(xb, ((0, Bp - B), (0, 0)))
        ab = jnp.pad(ab, ((0, Bp - B), (0, 0)))

    act = lambda d: pl.BlockSpec((TB, d), lambda i: (i, 0))       # batch-tiled
    res = lambda r, c: pl.BlockSpec((r, c), lambda i: (0, 0))     # VMEM-resident

    qp = pl.pallas_call(
        soft_q_kernel,
        out_shape=jax.ShapeDtypeStruct((Bp, Np), jnp.float32),
        grid=(Bp // TB,),
        in_specs=[
            act(Dx),            # x tile            (TB, Dx)  bf16
            act(Da),            # a tile            (TB, Da)  bf16
            res(Dx, H),         # W1 rows for x     (Dx, 512) bf16
            res(Da, H),         # W1 rows for a     (Da, 512) bf16
            res(1, H),          # b1                (1, 512)  f32
            res(H, Np),         # W2 lane-padded    (512, 128) bf16
            res(1, Np),         # b2 lane-padded    (1, 128)  f32
        ],
        out_specs=pl.BlockSpec((TB, Np), lambda i: (i, 0)),
        compiler_params=pltpu.CompilerParams(
            dimension_semantics=("parallel",)),
    )(xb, ab, w1x, w1a, b1, w2p, b2p)

    return qp[:B, :out_d]


def init_params(key, input_shape, out_c, out_d, hidden=512):
    """Xavier-uniform weights, zero bias (HSAC layer_init 'xavier'/'zeros')."""
    k1, k2 = jax.random.split(key)
    fan_in1 = input_shape + out_c
    lim1 = (6.0 / (fan_in1 + hidden)) ** 0.5
    w1 = jax.random.uniform(k1, (fan_in1, hidden), jnp.float32, -lim1, lim1)
    b1 = jnp.zeros((1, hidden), jnp.float32)
    lim2 = (6.0 / (hidden + out_d)) ** 0.5
    w2 = jax.random.uniform(k2, (hidden, out_d), jnp.float32, -lim2, lim2)
    b2 = jnp.zeros((1, out_d), jnp.float32)
    return w1, b1, w2, b2


def prepare_params(params, input_shape, lane_pad=128):
    """Split W1 for the fused concat, lane-pad fc2, cast weights to bf16."""
    w1, b1, w2, b2 = params
    out_d = w2.shape[1]
    Np = _round_up(max(out_d, 1), lane_pad)
    w1x = w1[:input_shape].astype(jnp.bfloat16)
    w1a = w1[input_shape:].astype(jnp.bfloat16)
    w2p = jnp.zeros((w2.shape[0], Np), jnp.bfloat16)
    w2p = w2p.at[:, :out_d].set(w2.astype(jnp.bfloat16))
    b2p = jnp.zeros((1, Np), jnp.float32)
    b2p = b2p.at[:, :out_d].set(b2.astype(jnp.float32).reshape(1, -1))
    b1f = b1.astype(jnp.float32).reshape(1, -1)
    return w1x, w1a, b1f, w2p, b2p, out_d


if __name__ == "__main__":
    # Small shapes consistent with the module: state dim 16, continuous
    # action dim 4, discrete action dim 8, batch 4, hidden 512.
    B, input_shape, out_c, out_d = 4, 16, 4, 8

    key = jax.random.PRNGKey(0)
    kx, ka, kp = jax.random.split(key, 3)
    x = jax.random.normal(kx, (B, input_shape), jnp.float32)
    a = jax.random.normal(ka, (B, out_c), jnp.float32)
    params = init_params(kp, input_shape, out_c, out_d)
    prepared = prepare_params(params, input_shape)

    q = soft_q_forward(x, a, prepared)
    q = jax.block_until_ready(q)
    assert q.shape == (B, out_d)

    # Matched-precision reference (bf16 inputs/weights, f32 accumulation).
    w1x, w1a, b1, w2p, b2p, _ = prepared
    xb, ab = x.astype(jnp.bfloat16), a.astype(jnp.bfloat16)
    h_ref = jnp.maximum(
        jnp.dot(xb, w1x, preferred_element_type=jnp.float32)
        + jnp.dot(ab, w1a, preferred_element_type=jnp.float32) + b1, 0.0)
    q_ref = (jnp.dot(h_ref.astype(jnp.bfloat16), w2p,
                     preferred_element_type=jnp.float32) + b2p)[:, :out_d]
    assert jnp.allclose(q, q_ref, atol=1e-3, rtol=1e-3)

    # Loose sanity check against full-f32 math (bounds bf16 quantization err).
    w1, b1f, w2, b2 = params
    q_f32 = jnp.maximum(jnp.concatenate([x, a], 1) @ w1 + b1f, 0.0) @ w2 + b2
    assert jnp.allclose(q, q_f32, atol=0.25, rtol=0.05)

    print("KERNEL_OK")
</pallas_src>

<mosaic_0001>
module attributes {stable_mosaic.version = 11 : i64} {
  func.func @soft_q_kernel(%arg0: i32, %arg1: memref<8x16xbf16, #tpu.memory_space<vmem>>, %arg2: memref<8x4xbf16, #tpu.memory_space<vmem>>, %arg3: memref<16x512xbf16, #tpu.memory_space<vmem>>, %arg4: memref<4x512xbf16, #tpu.memory_space<vmem>>, %arg5: memref<1x512xf32, #tpu.memory_space<vmem>>, %arg6: memref<512x128xbf16, #tpu.memory_space<vmem>>, %arg7: memref<1x128xf32, #tpu.memory_space<vmem>>, %arg8: memref<8x128xf32, #tpu.memory_space<vmem>>) attributes {dimension_semantics = [#tpu.dimension_semantics<parallel>], iteration_bounds = array<i64: 1>, scalar_prefetch = 0 : i64, scratch_operands = 0 : i64, tpu.core_type = #tpu.core_type<tc>, window_params = [{transform_indices = @transform_0, window_bounds = array<i64: 8, 16>}, {transform_indices = @transform_1, window_bounds = array<i64: 8, 4>}, {pipeline_mode = #tpu.pipeline_mode<synchronous>, transform_indices = @transform_2, window_bounds = array<i64: 16, 512>}, {pipeline_mode = #tpu.pipeline_mode<synchronous>, transform_indices = @transform_3, window_bounds = array<i64: 4, 512>}, {pipeline_mode = #tpu.pipeline_mode<synchronous>, transform_indices = @transform_4, window_bounds = array<i64: 1, 512>}, {pipeline_mode = #tpu.pipeline_mode<synchronous>, transform_indices = @transform_5, window_bounds = array<i64: 512, 128>}, {pipeline_mode = #tpu.pipeline_mode<synchronous>, transform_indices = @transform_6, window_bounds = array<i64: 1, 128>}, {transform_indices = @transform_7, window_bounds = array<i64: 8, 128>}]} {
    %c0 = arith.constant 0 : index
    %c0_0 = arith.constant 0 : index
    %0 = vector.load %arg1[%c0, %c0_0] : memref<8x16xbf16, #tpu.memory_space<vmem>>, vector<8x16xbf16>
    %c0_1 = arith.constant 0 : index
    %c0_2 = arith.constant 0 : index
    %1 = vector.load %arg3[%c0_1, %c0_2] : memref<16x512xbf16, #tpu.memory_space<vmem>>, vector<16x512xbf16>
    %cst = arith.constant dense<0.000000e+00> : vector<8x512xf32>
    %2 = tpu.matmul %0, %1, %cst {dimension_numbers = #tpu.dot_dimension_numbers<[1], [0], [0], [1], [0, 0, 1, 1], [], []>} : vector<8x16xbf16>, vector<16x512xbf16>, vector<8x512xf32> -> vector<8x512xf32>
    %c0_3 = arith.constant 0 : index
    %c0_4 = arith.constant 0 : index
    %3 = vector.load %arg2[%c0_3, %c0_4] : memref<8x4xbf16, #tpu.memory_space<vmem>>, vector<8x4xbf16>
    %c0_5 = arith.constant 0 : index
    %c0_6 = arith.constant 0 : index
    %4 = vector.load %arg4[%c0_5, %c0_6] : memref<4x512xbf16, #tpu.memory_space<vmem>>, vector<4x512xbf16>
    %cst_7 = arith.constant dense<0.000000e+00> : vector<8x512xf32>
    %5 = tpu.matmul %3, %4, %cst_7 {dimension_numbers = #tpu.dot_dimension_numbers<[1], [0], [0], [1], [0, 0, 1, 1], [], []>} : vector<8x4xbf16>, vector<4x512xbf16>, vector<8x512xf32> -> vector<8x512xf32>
    %6 = arith.addf %2, %5 : vector<8x512xf32>
    %c0_8 = arith.constant 0 : index
    %c0_9 = arith.constant 0 : index
    %7 = vector.load %arg5[%c0_8, %c0_9] : memref<1x512xf32, #tpu.memory_space<vmem>>, vector<1x512xf32>
    %8 = vector.broadcast %7 : vector<1x512xf32> to vector<8x512xf32>
    %9 = arith.addf %6, %8 : vector<8x512xf32>
    %cst_10 = arith.constant 0.000000e+00 : f32
    %10 = vector.broadcast %cst_10 : f32 to vector<8x512xf32>
    %11 = arith.maximumf %9, %10 : vector<8x512xf32>
    %12 = arith.truncf %11 : vector<8x512xf32> to vector<8x512xbf16>
    %c0_11 = arith.constant 0 : index
    %c0_12 = arith.constant 0 : index
    %13 = vector.load %arg6[%c0_11, %c0_12] : memref<512x128xbf16, #tpu.memory_space<vmem>>, vector<512x128xbf16>
    %cst_13 = arith.constant dense<0.000000e+00> : vector<8x128xf32>
    %14 = tpu.matmul %12, %13, %cst_13 {dimension_numbers = #tpu.dot_dimension_numbers<[1], [0], [0], [1], [0, 0, 1, 1], [], []>} : vector<8x512xbf16>, vector<512x128xbf16>, vector<8x128xf32> -> vector<8x128xf32>
    %c0_14 = arith.constant 0 : index
    %c0_15 = arith.constant 0 : index
    %15 = vector.load %arg7[%c0_14, %c0_15] : memref<1x128xf32, #tpu.memory_space<vmem>>, vector<1x128xf32>
    %16 = vector.broadcast %15 : vector<1x128xf32> to vector<8x128xf32>
    %17 = arith.addf %14, %16 : vector<8x128xf32>
    %c0_16 = arith.constant 0 : index
    %c0_17 = arith.constant 0 : index
    %18 = vector.load %arg8[%c0_16, %c0_17] : memref<8x128xf32, #tpu.memory_space<vmem>>, vector<8x128xf32>
    tpu.vector_store %arg8[%c0_16, %c0_17], %17 {strides = array<i32>} : memref<8x128xf32, #tpu.memory_space<vmem>>, vector<8x128xf32>,
    return
  }
  func.func @transform_0(%arg0: i32) -> (i32, i32) {
    %c0_i32 = arith.constant 0 : i32
    %c0_i32_0 = arith.constant 0 : i32
    return %arg0, %c0_i32 : i32, i32
  }
  func.func @transform_1(%arg0: i32) -> (i32, i32) {
    %c0_i32 = arith.constant 0 : i32
    %c0_i32_0 = arith.constant 0 : i32
    return %arg0, %c0_i32 : i32, i32
  }
  func.func @transform_2(%arg0: i32) -> (i32, i32) {
    %c0_i32 = arith.constant 0 : i32
    %c0_i32_0 = arith.constant 0 : i32
    %c0_i32_1 = arith.constant 0 : i32
    return %c0_i32, %c0_i32_0 : i32, i32
  }
  func.func @transform_3(%arg0: i32) -> (i32, i32) {
    %c0_i32 = arith.constant 0 : i32
    %c0_i32_0 = arith.constant 0 : i32
    %c0_i32_1 = arith.constant 0 : i32
    return %c0_i32, %c0_i32_0 : i32, i32
  }
  func.func @transform_4(%arg0: i32) -> (i32, i32) {
    %c0_i32 = arith.constant 0 : i32
    %c0_i32_0 = arith.constant 0 : i32
    %c0_i32_1 = arith.constant 0 : i32
    return %c0_i32, %c0_i32_0 : i32, i32
  }
  func.func @transform_5(%arg0: i32) -> (i32, i32) {
    %c0_i32 = arith.constant 0 : i32
    %c0_i32_0 = arith.constant 0 : i32
    %c0_i32_1 = arith.constant 0 : i32
    return %c0_i32, %c0_i32_0 : i32, i32
  }
  func.func @transform_6(%arg0: i32) -> (i32, i32) {
    %c0_i32 = arith.constant 0 : i32
    %c0_i32_0 = arith.constant 0 : i32
    %c0_i32_1 = arith.constant 0 : i32
    return %c0_i32, %c0_i32_0 : i32, i32
  }
  func.func @transform_7(%arg0: i32) -> (i32, i32) {
    %c0_i32 = arith.constant 0 : i32
    %c0_i32_0 = arith.constant 0 : i32
    return %arg0, %c0_i32 : i32, i32
  }
}

</mosaic_0001>

<bundles_post_ra>
// kernel: tpu_custom_call.1
= control target key start
LH: loop header
LB: loop body
LE: loop exit
PB: predicated region body
PF: predicated region fallthrough
CT: control target
= control target key end

     0   :  { %12 = vsyncpa [#allocation3], 0  ;;  %s1002_s0 = inlined_call_operand.hbm [shape: bf16[8,16], index: 0, kind: input, shape index: {}]   ;;  %s1003_s1 = inlined_call_operand.vmem [shape: bf16[8,4], index: 1, kind: input, shape index: {}]   ;;  %s1004_s2 = inlined_call_operand.hbm [shape: bf16[16,512], index: 2, kind: input, shape index: {}]   ;;  %s1005_s3 = inlined_call_operand.vmem [shape: bf16[4,512], index: 3, kind: input, shape index: {}]   ;;  %s1006_s4 = inlined_call_operand.hbm [shape: f32[1,512], index: 4, kind: input, shape index: {}]   ;;  %s1007_s5 = inlined_call_operand.hbm [shape: bf16[512,128], index: 5, kind: input, shape index: {}]   ;;  %s1008_s6 = inlined_call_operand.vmem [shape: f32[1,128], index: 6, kind: input, shape index: {}]   ;;  %s1009_s7 = inlined_call_operand.hbm [shape: f32[8,128], index: 7, kind: output, shape index: {}]  }
   0x1   :  { %13 = vsyncpa [#allocation6], 0 }
   0x2   :  { %14 = vsyncpa [#allocation9], 0  ;;  %s33_s26 = sshll.u32 %s1004_s2, 4  ;;  %s34_s26 = int_to_ptr.hbm [resolvable:$true] %s33_s26 }
   0x3   :  { %15 = vsyncpa [#allocation4], 0  ;;  %s921_s27 = smov [#allocation5]   ;;  %s21_s8 = sshll.u32 %s1002_s0, 4  ;;  %s22_s8 = int_to_ptr.hbm [resolvable:$true] %s21_s8 }
   0x4   :  { %s35_s28 = sshll.u32 %s921_s27, 4  ;;  %s922_s9 = smov 256   ;;  %s36_s28 = int_to_ptr.vmem [resolvable:$true] %s35_s28 }
   0x5   :  { %s923_s10 = smov 16   ;;  %s924_s11 = smov [#allocation2]  }
   0x6   :  { %41 = dma.hbm_to_vmem [thread:$0]  %s34_s26, 512, %s36_s28, [#allocation6], %s922_s9, %s922_s9, %s923_s10  }
   0x7   :  { %s23_s12 = sshll.u32 %s924_s11, 4  ;;  %s49_s15 = sshll.u32 %s1006_s4, 4  ;;  %s24_s12 = int_to_ptr.vmem [resolvable:$true] %s23_s12  ;;  %s50_s15 = int_to_ptr.hbm [resolvable:$true] %s49_s15 }
   0x8   :  { %26 = dma.hbm_to_vmem [thread:$0]  %s22_s8, 64, %s24_s12, [#allocation3]  }
   0x9   :  { %s59_s17 = sshll.u32 %s1007_s5, 4  ;;  %s925_s18 = smov [#allocation7]   ;;  %s60_s17 = int_to_ptr.hbm [resolvable:$true] %s59_s17 }
   0xa   :  { %s51_s19 = sshll.u32 %s925_s18, 4  ;;  %s926_s0 = smov [#allocation8]   ;;  %s52_s19 = int_to_ptr.vmem [resolvable:$true] %s51_s19 }
   0xb   :  { %54 = dma.hbm_to_vmem [thread:$0]  %s50_s15, 64, %s52_s19, [#allocation6]  }
   0xc   :  { %s61_s20 = sshll.u32 %s926_s0, 4  ;;  %s927_s21 = smov 64   ;;  %s62_s20 = int_to_ptr.vmem [resolvable:$true] %s61_s20 }
   0xd   :  { %s928_s22 = smov 4  }
   0xe   :  { %67 = dma.hbm_to_vmem [thread:$0]  %s60_s17, 4096, %s62_s20, [#allocation9], %s927_s21, %s927_s21, %s928_s22  }
   0xf   :  { %913 = dma.done.wait [#allocation3], 64  }
  0x10   :  { %914 = vsyncadd [#allocation3], 4294967232 }
  0x11   :  { %915 = dma.done.wait [#allocation6], 576  }
  0x12   :  { %916 = vsyncadd [#allocation6], 4294966720 }
  0x13   :  { %917 = dma.done.wait [#allocation9], 4096  }
  0x14   :  { %918 = vsyncadd [#allocation9], 4294963200  ;;  %v93_v0 = vld [vmem:[%s1005_s3] sm:$0xff]  ;;  %v601_v1 = vld [vmem:[#allocation5] sm:$0xf]  ;;  %vm104_vm0 = vcmask 1041408  }
  0x15   :  { %95 = vst [vmem:[#allocation1] ss:$4 sm:$0xff] %v93_v0  ;;  %v749_v2 = vld [vmem:[#allocation5 + $0xc] sm:$0xf0]  ;;  %v609_v3 = vld [vmem:[#allocation5 + $0x8] sm:$0xf] }
  0x16   :  { %v750_v4 = vld [vmem:[#allocation5 + $0x14] sm:$0xf0]  ;;  %v748_v5 = vld [vmem:[#allocation5 + $0xc] sm:$0xf]  ;;  %v611_v6 = vld [vmem:[#allocation5 + $0x18] sm:$0xf0]  ;;  %v602_v7 = vor.u32 %v749_v2, %v601_v1 }
  0x17   :  { %v747_v8 = vld [vmem:[#allocation5 + $0x4] sm:$0xf]  ;;  %v603_v9 = vld [vmem:[#allocation5 + $0x10] sm:$0xf0]  ;;  %v610_v12 = vor.u32 %v750_v4, %v609_v3  ;;  %vm100_vm1 = vcmask 31744   ;;  %v614_v19 = vor.u32 %v748_v5, %v611_v6  ;;  %v758_v22 = vld [vmem:[#allocation8 + $0x38] sm:$0xff] }
  0x18   :  { %v92_v18 = vld [vmem:[%s1003_s1] sm:$0xf]  ;;  %v606_v21 = vor.u32 %v747_v8, %v603_v9  ;;  %v766_v23 = vld [vmem:[#allocation8 + $0x78] sm:$0xff]  ;;  %vm185_vm2 = vcmask 130048   ;;  %v756_v29 = vld [vmem:[#allocation8 + $0x28] sm:$0xff]  ;;  %s929_s25 = smov [#allocation10]  }
  0x19   :  { %v757_v24 = vld [vmem:[#allocation8 + $0x30] sm:$0xff]  ;;  %v87_v26 = vld [vmem:[#allocation2] sm:$0xf]  ;;  %v764_v30 = vld [vmem:[#allocation8 + $0x68] sm:$0xff]  ;;  %s581_s26 = sshll.u32 %s929_s25, 4  ;;  %s583_s29 = sshll.u32 %s1009_s7, 4  ;;  %s582_s26 = int_to_ptr.vmem [resolvable:$true] %s581_s26  ;;  %s584_s29 = int_to_ptr.hbm [resolvable:$true] %s583_s29 }
  0x1a   :  { %v765_v25 = vld [vmem:[#allocation8 + $0x70] sm:$0xff]  ;;  %v774_v27 = vld [vmem:[#allocation8 + $0xb8] sm:$0xff]  ;;  %v755_v33 = vld [vmem:[#allocation8 + $0x20] sm:$0xff] }
  0x1b   :  { %v782_v28 = vld [vmem:[#allocation8 + $0xf8] sm:$0xff]  ;;  %v773_v31 = vld [vmem:[#allocation8 + $0xb0] sm:$0xff]  ;;  %v763_v34 = vld [vmem:[#allocation8 + $0x60] sm:$0xff] }
  0x1c   :  { %v96_v10 = vld.sshfl [vmem:[#allocation1] sm:$0xff pattern:$0x73625140]  ;;  %v97_v11 = vld.sshfl [vmem:[#allocation1 + $0x8] sm:$0xff pattern:$0x73625140] }
  0x1d   :  { %v105_v13 = vsel %vm104_vm0, %v96_v10, 0  ;;  %v107_v14 = vsel %vm104_vm0, %v97_v11, 0  ;;  %v98_v15 = vld.sshfl [vmem:[#allocation1 + $0x10] sm:$0xff pattern:$0x73625140]  ;;  %v781_v32 = vld [vmem:[#allocation8 + $0xf0] sm:$0xff] }
  0x1e   :  { %120 = vmatpush.bf16.msra.mxu0 %v105_v13  ;;  %133 = vmatpush.bf16.msra.mxu1 %v107_v14  ;;  %v109_v16 = vsel %vm104_vm0, %v98_v15, 0  ;;  %v99_v17 = vld.sshfl [vmem:[#allocation1 + $0x18] sm:$0xff pattern:$0x73625140]  ;;  %v754_v37 = vld [vmem:[#allocation8 + $0x18] sm:$0xff]  ;;  %v771_v39 = vld [vmem:[#allocation8 + $0xa0] sm:$0xff] }
  0x1f   :  { %146 = vmatpush.bf16.msra.mxu2 %v109_v16  ;;  %v111_v20 = vsel %vm104_vm0, %v99_v17, 0  ;;  %v772_v35 = vld [vmem:[#allocation8 + $0xa8] sm:$0xff]  ;;  %v762_v38 = vld [vmem:[#allocation8 + $0x58] sm:$0xff]  ;;  %v779_v40 = vld [vmem:[#allocation8 + $0xe0] sm:$0xff] }
  0x20   :  { %159 = vmatpush.bf16.msra.mxu3 %v111_v20  ;;  %v780_v36 = vld [vmem:[#allocation8 + $0xe8] sm:$0xff]  ;;  %v753_v41 = vld [vmem:[#allocation8 + $0x10] sm:$0xff]  ;;  %v770_v43 = vld [vmem:[#allocation8 + $0x98] sm:$0xff] }
  0x21   :  { %595 = vmatmul.msk.bf16.vlgmr.msra.gmra.mxu0 %vm100_vm1, %v92_v18  ;;  %596 = vmatmul.msk.bf16.vlgmr.msra.gmra.mxu1 %vm100_vm1, %v92_v18  ;;  %v761_v42 = vld [vmem:[#allocation8 + $0x50] sm:$0xff]  ;;  %v778_v44 = vld [vmem:[#allocation8 + $0xd8] sm:$0xff]  ;;  %v752_v45 = vld [vmem:[#allocation8 + $0x8] sm:$0xff] }
  0x22   :  { %196 = vmatpush.bf16.msrb.mxu0 %v602_v7  ;;  %597 = vmatmul.msk.bf16.vlgmr.msra.gmra.mxu2 %vm100_vm1, %v92_v18  ;;  %v760_v46 = vld [vmem:[#allocation8 + $0x48] sm:$0xff]  ;;  %v769_v47 = vld [vmem:[#allocation8 + $0x90] sm:$0xff]  ;;  %v751_v49 = vld [vmem:[#allocation8] sm:$0xff] }
  0x23   :  { %222 = vmatpush.bf16.msrb.mxu2 %v610_v12  ;;  %598 = vmatmul.msk.bf16.vlgmr.msra.gmra.mxu3 %vm100_vm1, %v92_v18  ;;  %v777_v48 = vld [vmem:[#allocation8 + $0xd0] sm:$0xff]  ;;  %v759_v50 = vld [vmem:[#allocation8 + $0x40] sm:$0xff]  ;;  %v768_v51 = vld [vmem:[#allocation8 + $0x88] sm:$0xff] }
  0x24   :  { %235 = vmatpush.bf16.msrb.mxu3 %v614_v19  ;;  %209 = vmatpush.bf16.msrb.mxu1 %v606_v21  ;;  %v776_v52 = vld [vmem:[#allocation8 + $0xc8] sm:$0xff]  ;;  %v767_v53 = vld [vmem:[#allocation8 + $0x80] sm:$0xff]  ;;  %v241_v61 = vld [vmem:[#allocation7] sm:$0xf] }
  0x25   :  { %v775_v54 = vld [vmem:[#allocation8 + $0xc0] sm:$0xff]  ;;  %v243_v63 = vperm.slane %v241_v61, 0  ;;  %v244_v2 = vperm.slane %v241_v61, 1  ;;  %v245_v10 = vperm.slane %v241_v61, 2  ;;  %v246_v13 = vperm.slane %v241_v61, 3 }
  0x26   :  { %523 = vmatpush.bf16.msra.mxu0 %v758_v22 }
  0x27   :  { %549 = vmatpush.bf16.msra.mxu2 %v774_v27 }
  0x28   :  { %536 = vmatpush.bf16.msra.mxu1 %v766_v23  ;;  %562 = vmatpush.bf16.msra.mxu3 %v782_v28 }
  0x2a   :  { %524 = vmatpush.bf16.msra.mxu0 %v757_v24 }
  0x2b   :  { %550 = vmatpush.bf16.msra.mxu2 %v773_v31 }
  0x2c   :  { %537 = vmatpush.bf16.msra.mxu1 %v765_v25  ;;  %563 = vmatpush.bf16.msra.mxu3 %v781_v32 }
  0x2e   :  { %525 = vmatpush.bf16.msra.mxu0 %v756_v29 }
  0x2f   :  { %551 = vmatpush.bf16.msra.mxu2 %v772_v35 }
  0x30   :  { %538 = vmatpush.bf16.msra.mxu1 %v764_v30  ;;  %564 = vmatpush.bf16.msra.mxu3 %v780_v36  ;;  %v792_v30 = vld [vmem:[%s1008_s6] ss:$0 sm:$0xff] }
  0x31   :  { %615 = vmatmul.msk.bf16.vlgmr.msrb.gmra.mxu0 %vm185_vm2, %v87_v26  ;;  %616 = vmatmul.msk.bf16.vlgmr.msrb.gmra.mxu1 %vm185_vm2, %v87_v26 }
  0x32   :  { %617 = vmatmul.msk.bf16.vlgmr.msrb.gmra.mxu2 %vm185_vm2, %v87_v26  ;;  %526 = vmatpush.bf16.msra.mxu0 %v755_v33 }
  0x33   :  { %618 = vmatmul.msk.bf16.vlgmr.msrb.gmra.mxu3 %vm185_vm2, %v87_v26  ;;  %552 = vmatpush.bf16.msra.mxu2 %v771_v39 }
  0x34   :  { %539 = vmatpush.bf16.msra.mxu1 %v763_v34  ;;  %565 = vmatpush.bf16.msra.mxu3 %v779_v40 }
  0x36   :  { %527 = vmatpush.bf16.msra.mxu0 %v754_v37 }
  0x37   :  { %553 = vmatpush.bf16.msra.mxu2 %v770_v43 }
  0x38   :  { %540 = vmatpush.bf16.msra.mxu1 %v762_v38  ;;  %566 = vmatpush.bf16.msra.mxu3 %v778_v44 }
  0x3a   :  { %528 = vmatpush.bf16.msra.mxu0 %v753_v41 }
  0x3b   :  { %554 = vmatpush.bf16.msra.mxu2 %v769_v47 }
  0x3c   :  { %541 = vmatpush.bf16.msra.mxu1 %v761_v42  ;;  %567 = vmatpush.bf16.msra.mxu3 %v777_v48 }
  0x3e   :  { %529 = vmatpush.bf16.msra.mxu0 %v752_v45 }
  0x3f   :  { %555 = vmatpush.bf16.msra.mxu2 %v768_v51 }
  0x40   :  { %542 = vmatpush.bf16.msra.mxu1 %v760_v46  ;;  %568 = vmatpush.bf16.msra.mxu3 %v776_v52 }
  0x42   :  { %530 = vmatpush.bf16.msra.mxu0 %v751_v49 }
  0x43   :  { %556 = vmatpush.bf16.msra.mxu2 %v767_v53 }
  0x44   :  { %543 = vmatpush.bf16.msra.mxu1 %v759_v50  ;;  %569 = vmatpush.bf16.msra.mxu3 %v775_v54 }
  0x9e   :  { %v122_v55 = vpop.f32.mrf.mxu0  ;;  %v135_v56 = vpop.f32.mrf.mxu1 }
  0xa5   :  { %v148_v57 = vpop.f32.mrf.mxu2 }
  0xa6   :  { %v161_v58 = vpop.f32.mrf.mxu3  ;;  %v124_v59 = vpop.f32.mrf.mxu0 }
  0xa7   :  { %v137_v60 = vpop.f32.mrf.mxu1 }
  0xad   :  { %v150_v62 = vpop.f32.mrf.mxu2 }
  0xae   :  { %v163_v0 = vpop.f32.mrf.mxu3  ;;  %v198_v1 = vpop.f32.mrf.mxu0 }
  0xaf   :  { %v199_v3 = vadd.f32 %v198_v1, %v122_v55  ;;  %v211_v4 = vpop.f32.mrf.mxu1 }
  0xb0   :  { %v212_v5 = vadd.f32 %v211_v4, %v135_v56 }
  0xb1   :  { %v251_v6 = vadd.f32 %v243_v63, %v199_v3 }
  0xb2   :  { %v252_v7 = vadd.f32 %v244_v2, %v212_v5 }
  0xb3   :  { %v255_v8 = vmax.f32 %v251_v6, 0.0 }
  0xb4   :  { %v256_v9 = vmax.f32 %v252_v7, 0.0 }
  0xb5   :  { %v259_v11 = vpack.c.bf16 %v255_v8, %v255_v8  ;;  %v224_v12 = vpop.f32.mrf.mxu2 }
  0xb6   :  { %v260_v14 = vpack.c.bf16 %v256_v9, %v256_v9  ;;  %v225_v15 = vadd.f32 %v224_v12, %v148_v57  ;;  %v237_v16 = vpop.f32.mrf.mxu3  ;;  %v200_v17 = vpop.f32.mrf.mxu0 }
  0xb7   :  { %v238_v18 = vadd.f32 %v237_v16, %v161_v58  ;;  %531 = vmatmul.bf16.vlgmr.msra.gmra.mxu0 %v259_v11  ;;  %v213_v19 = vpop.f32.mrf.mxu1 }
  0xb8   :  { %v253_v20 = vadd.f32 %v245_v10, %v225_v15  ;;  %544 = vmatmul.bf16.vlgmr.msra.gmra.mxu1 %v260_v14 }
  0xb9   :  { %v254_v21 = vadd.f32 %v246_v13, %v238_v18 }
  0xba   :  { %v257_v22 = vmax.f32 %v253_v20, 0.0 }
  0xbb   :  { %v258_v23 = vmax.f32 %v254_v21, 0.0 }
  0xbc   :  { %v261_v24 = vpack.c.bf16 %v257_v22, %v257_v22 }
  0xbd   :  { %v262_v25 = vpack.c.bf16 %v258_v23, %v258_v23  ;;  %v226_v26 = vpop.f32.mrf.mxu2 }
  0xbe   :  { %v239_v27 = vpop.f32.mrf.mxu3  ;;  %557 = vmatmul.bf16.vlgmr.msra.gmra.mxu2 %v261_v24 }
  0xbf   :  { %570 = vmatmul.bf16.vlgmr.msra.gmra.mxu3 %v262_v25 }
 0x134   :  { %v532_v28 = vpop.f32.mrf.mxu0 }
 0x135   :  { %v545_v29 = vpop.f32.mrf.mxu1  ;;  %v533_v31 = vadd.f32 %v792_v30, %v532_v28 }
 0x137   :  { %v546_v34 = vadd.f32 %v545_v29, %v533_v31 }
 0x13c   :  { %v534_v32 = vpop.f32.mrf.mxu0 }
 0x13d   :  { %v547_v33 = vpop.f32.mrf.mxu1 }
 0x141   :  { %v558_v35 = vpop.f32.mrf.mxu2 }
 0x142   :  { %v559_v36 = vadd.f32 %v558_v35, %v546_v34  ;;  %v571_v37 = vpop.f32.mrf.mxu3 }
 0x144   :  { %v572_v38 = vadd.f32 %v571_v37, %v559_v36 }
 0x146   :  { %575 = vst [vmem:[#allocation10] sm:$0xff] %v572_v38 }
 0x147   :  { %586 = dma.vmem_to_hbm [thread:$0]  %s582_s26, 128, %s584_s29, [#allocation4]  }
 0x149   :  { %v560_v39 = vpop.f32.mrf.mxu2 }
 0x14a   :  { %v573_v40 = vpop.f32.mrf.mxu3 }
 0x14b   :  { %919 = dma.done.wait [#allocation4], 128  }
 0x14c   :  { %920 = vsyncadd [#allocation4], 4294967168 }
 0x14d   :  { %591 = vsyncpa [#allocation3], 1 }
 0x14e   :  { %592 = vsyncpa [#allocation6], 1 }
 0x14f   :  { %593 = vsyncpa [#allocation9], 1 }
 0x150   :  { %594 = vsyncpa [#allocation4], 1 }

</bundles_post_ra>
